<compile_context>
chip_gen: v7x
topology: tpu7x:2x2x1
jax: 0.10.0
libtpu: 0.0.40
codegen_flags: <defaults>
</compile_context>

<pallas_src>
import jax
import jax.numpy as jnp
from jax.experimental import pallas as pl
from jax.experimental.pallas import tpu as pltpu

LANES = 128
SUBLANES = 8
MAX_BLOCK_ROWS = 2048          # 2048*128 f32 = 1 MiB per operand per buffer
NUM_CORE_SLICES = 2            # leading "parallel" grid axis (2 TCs on v7x)


def _make_pair_sums_kernel(total_rows, block_rows, blocks_per_core):
    groups = block_rows // SUBLANES  # block_rows is always a multiple of 8

    def kernel(m_ref, i_ref, g_ref, mi_ref, mg_ref, ig_ref):
        c = pl.program_id(0)   # core slice (parallel)
        j = pl.program_id(1)   # reduction step (arbitrary)

        @pl.when(j == 0)
        def _init():
            mi_ref[...] = jnp.zeros_like(mi_ref)
            mg_ref[...] = jnp.zeros_like(mg_ref)
            ig_ref[...] = jnp.zeros_like(ig_ref)

        # Row-validity mask: handles the partial last block and the (at most one)
        # duplicated/clamped block of the second core slice.
        row_start = (c * blocks_per_core + j) * block_rows
        valid_rows = total_rows - row_start
        row_ids = jax.lax.broadcasted_iota(jnp.int32, (block_rows, LANES), 0)
        mask = row_ids < valid_rows

        m = m_ref[...].astype(jnp.float32)
        i = i_ref[...].astype(jnp.float32)
        g = g_ref[...].astype(jnp.float32)
        zero = jnp.zeros((), jnp.float32)

        d_mi = jnp.where(mask, jnp.abs(m - i), zero)
        d_mg = jnp.where(mask, jnp.abs(m - g), zero)
        d_ig = jnp.where(mask, jnp.abs(i - g), zero)

        # Fold row-groups into an (8,128) vector accumulator with pure VPU adds;
        # the final cross-lane reduce happens once, outside the kernel.
        mi_ref[0] += d_mi.reshape(groups, SUBLANES, LANES).sum(axis=0)
        mg_ref[0] += d_mg.reshape(groups, SUBLANES, LANES).sum(axis=0)
        ig_ref[0] += d_ig.reshape(groups, SUBLANES, LANES).sum(axis=0)

    return kernel


def _pair_l1_sums(f_m, f_i, f_g):
    """One fused pass: returns (sum|m-i|, sum|m-g|, sum|i-g|) as f32 scalars."""
    assert f_m.shape == f_i.shape == f_g.shape, "LGCLoss expects matching shapes"
    n_elems = f_m.size

    m = f_m.reshape(-1)
    i = f_i.reshape(-1)
    g = f_g.reshape(-1)

    align = SUBLANES * LANES  # 1024
    if n_elems % align != 0:
        # Rare tail case: pad to a (rows,128) slab with rows % 8 == 0.
        # Padding contributes |0-0| = 0, so the sums stay exact.
        pad = align - (n_elems % align)
        m = jnp.pad(m, (0, pad))
        i = jnp.pad(i, (0, pad))
        g = jnp.pad(g, (0, pad))
    # else: pure reshape, no HBM copy.

    rows = m.size // LANES
    m2 = m.reshape(rows, LANES)
    i2 = i.reshape(rows, LANES)
    g2 = g.reshape(rows, LANES)

    block_rows = min(MAX_BLOCK_ROWS, rows)          # rows % 8 == 0 guaranteed
    total_blocks = pl.cdiv(rows, block_rows)
    blocks_per_core = pl.cdiv(total_blocks, NUM_CORE_SLICES)

    def in_map(c, j):
        # Clamp so the DMA never targets an out-of-range block; the row mask
        # zeroes any duplicated contribution.
        return (jnp.minimum(c * blocks_per_core + j, total_blocks - 1), 0)

    in_spec = pl.BlockSpec((block_rows, LANES), in_map)
    out_spec = pl.BlockSpec((1, SUBLANES, LANES), lambda c, j: (c, 0, 0))
    out_sd = jax.ShapeDtypeStruct((NUM_CORE_SLICES, SUBLANES, LANES), jnp.float32)

    kernel = _make_pair_sums_kernel(rows, block_rows, blocks_per_core)

    itemsize = m2.dtype.itemsize
    bytes_accessed = 3 * rows * LANES * itemsize \
        + 3 * NUM_CORE_SLICES * SUBLANES * LANES * 4
    flops = 12 * rows * LANES  # 3x (sub + abs + mask-select + acc add)

    sums_mi, sums_mg, sums_ig = pl.pallas_call(
        kernel,
        out_shape=(out_sd, out_sd, out_sd),
        grid_spec=pltpu.PrefetchScalarGridSpec(
            num_scalar_prefetch=0,
            grid=(NUM_CORE_SLICES, blocks_per_core),
            in_specs=[in_spec, in_spec, in_spec],
            out_specs=(out_spec, out_spec, out_spec),
        ),
        compiler_params=pltpu.CompilerParams(
            dimension_semantics=("parallel", "arbitrary"),
            vmem_limit_bytes=32 * 1024 * 1024,
        ),
        cost_estimate=pl.CostEstimate(
            flops=flops, transcendentals=0, bytes_accessed=bytes_accessed),
    )(m2, i2, g2)

    # Tiny final reductions (2*8*128 each) done in plain JAX.
    return jnp.sum(sums_mi), jnp.sum(sums_mg), jnp.sum(sums_ig), n_elems


def lgc_loss(feat_masked, feat_inpaint, feat_gt, lgc_weight=0.1):
    """Matches LGCLoss.forward: lambda * mean_over_layers(mean of 3 pairwise L1 means)."""
    total = jnp.float32(0.0)
    for f_m, f_i, f_g in zip(feat_masked, feat_inpaint, feat_gt):
        s_mi, s_mg, s_ig, n = _pair_l1_sums(f_m, f_i, f_g)
        l_mi = s_mi / jnp.float32(n)
        l_mg = s_mg / jnp.float32(n)
        l_ig = s_ig / jnp.float32(n)
        l_perc = (l_mi + l_mg + l_ig) / jnp.float32(3.0)
        total = total + l_perc
    total = total / jnp.float32(len(feat_gt))
    return (jnp.float32(lgc_weight) * total).astype(jnp.float32)


if __name__ == "__main__":
    key = jax.random.PRNGKey(0)
    # Two "feature pyramid" levels, small NCHW shapes.
    shapes = [(2, 4, 16, 16), (2, 8, 8, 8)]
    keys = jax.random.split(key, 3 * len(shapes))

    feat_masked, feat_inpaint, feat_gt = [], [], []
    k = 0
    for s in shapes:
        feat_masked.append(jax.random.normal(keys[k], s, dtype=jnp.float32)); k += 1
        feat_inpaint.append(jax.random.normal(keys[k], s, dtype=jnp.float32)); k += 1
        feat_gt.append(jax.random.normal(keys[k], s, dtype=jnp.float32)); k += 1

    lgc_weight = 0.1
    out = lgc_loss(feat_masked, feat_inpaint, feat_gt, lgc_weight=lgc_weight)
    out = jax.block_until_ready(out)

    # Pure-JAX reference (mirrors the PyTorch forward exactly).
    ref = jnp.float32(0.0)
    for f_m, f_i, f_g in zip(feat_masked, feat_inpaint, feat_gt):
        l_mi = jnp.mean(jnp.abs(f_m - f_i))
        l_mg = jnp.mean(jnp.abs(f_m - f_g))
        l_ig = jnp.mean(jnp.abs(f_i - f_g))
        ref = ref + (l_mi + l_mg + l_ig) / 3.0
    ref = ref / len(feat_gt)
    ref = lgc_weight * ref

    assert jnp.allclose(out, ref, rtol=1e-5, atol=1e-6), (out, ref)
    print("KERNEL_OK")
</pallas_src>

<mosaic_0001>
module attributes {stable_mosaic.version = 11 : i64} {
  func.func @kernel(%arg0: i32, %arg1: i32, %arg2: memref<16x128xf32, #tpu.memory_space<vmem>>, %arg3: memref<16x128xf32, #tpu.memory_space<vmem>>, %arg4: memref<16x128xf32, #tpu.memory_space<vmem>>, %arg5: memref<1x8x128xf32, #tpu.memory_space<vmem>>, %arg6: memref<1x8x128xf32, #tpu.memory_space<vmem>>, %arg7: memref<1x8x128xf32, #tpu.memory_space<vmem>>) attributes {dimension_semantics = [#tpu.dimension_semantics<parallel>, #tpu.dimension_semantics<arbitrary>], iteration_bounds = array<i64: 2, 1>, scalar_prefetch = 0 : i64, scratch_operands = 0 : i64, tpu.core_type = #tpu.core_type<tc>, window_params = [{transform_indices = @transform_0, window_bounds = array<i64: 16, 128>}, {transform_indices = @transform_1, window_bounds = array<i64: 16, 128>}, {transform_indices = @transform_2, window_bounds = array<i64: 16, 128>}, {transform_indices = @transform_3, window_bounds = array<i64: 1, 8, 128>}, {transform_indices = @transform_4, window_bounds = array<i64: 1, 8, 128>}, {transform_indices = @transform_5, window_bounds = array<i64: 1, 8, 128>}]} {
    %c0_i32 = arith.constant 0 : i32
    %0 = arith.cmpi eq, %arg1, %c0_i32 : i32
    %1 = arith.extui %0 : i1 to i32
    %c0_i32_0 = arith.constant 0 : i32
    %2 = arith.cmpi ne, %1, %c0_i32_0 : i32
    scf.if %2 {
      %cst_30 = arith.constant 0.000000e+00 : f32
      %49 = vector.broadcast %cst_30 : f32 to vector<1x8x128xf32>
      %c0_31 = arith.constant 0 : index
      %c0_32 = arith.constant 0 : index
      %c0_33 = arith.constant 0 : index
      %50 = vector.load %arg5[%c0_31, %c0_32, %c0_33] : memref<1x8x128xf32, #tpu.memory_space<vmem>>, vector<1x8x128xf32>
      tpu.vector_store %arg5[%c0_31, %c0_32, %c0_33], %49 {strides = array<i32>} : memref<1x8x128xf32, #tpu.memory_space<vmem>>, vector<1x8x128xf32>,
      %cst_34 = arith.constant 0.000000e+00 : f32
      %51 = vector.broadcast %cst_34 : f32 to vector<1x8x128xf32>
      %c0_35 = arith.constant 0 : index
      %c0_36 = arith.constant 0 : index
      %c0_37 = arith.constant 0 : index
      %52 = vector.load %arg6[%c0_35, %c0_36, %c0_37] : memref<1x8x128xf32, #tpu.memory_space<vmem>>, vector<1x8x128xf32>
      tpu.vector_store %arg6[%c0_35, %c0_36, %c0_37], %51 {strides = array<i32>} : memref<1x8x128xf32, #tpu.memory_space<vmem>>, vector<1x8x128xf32>,
      %cst_38 = arith.constant 0.000000e+00 : f32
      %53 = vector.broadcast %cst_38 : f32 to vector<1x8x128xf32>
      %c0_39 = arith.constant 0 : index
      %c0_40 = arith.constant 0 : index
      %c0_41 = arith.constant 0 : index
      %54 = vector.load %arg7[%c0_39, %c0_40, %c0_41] : memref<1x8x128xf32, #tpu.memory_space<vmem>>, vector<1x8x128xf32>
      tpu.vector_store %arg7[%c0_39, %c0_40, %c0_41], %53 {strides = array<i32>} : memref<1x8x128xf32, #tpu.memory_space<vmem>>, vector<1x8x128xf32>,
    } else {
    }
    %c1_i32 = arith.constant 1 : i32
    %3 = arith.muli %arg0, %c1_i32 : i32
    %4 = arith.addi %3, %arg1 : i32
    %c16_i32 = arith.constant 16 : i32
    %5 = arith.muli %4, %c16_i32 : i32
    %c16_i32_1 = arith.constant 16 : i32
    %6 = arith.subi %c16_i32_1, %5 : i32
    %7 = tpu.iota {dimensions = array<i32: 0>} : vector<16x128xi32>
    %8 = vector.broadcast %6 : i32 to vector<16x128xi32>
    %9 = arith.cmpi slt, %7, %8 : vector<16x128xi32>
    %c0 = arith.constant 0 : index
    %c0_2 = arith.constant 0 : index
    %10 = vector.load %arg2[%c0, %c0_2] : memref<16x128xf32, #tpu.memory_space<vmem>>, vector<16x128xf32>
    %c0_3 = arith.constant 0 : index
    %c0_4 = arith.constant 0 : index
    %11 = vector.load %arg3[%c0_3, %c0_4] : memref<16x128xf32, #tpu.memory_space<vmem>>, vector<16x128xf32>
    %c0_5 = arith.constant 0 : index
    %c0_6 = arith.constant 0 : index
    %12 = vector.load %arg4[%c0_5, %c0_6] : memref<16x128xf32, #tpu.memory_space<vmem>>, vector<16x128xf32>
    %13 = arith.subf %10, %11 : vector<16x128xf32>
    %14 = math.absf %13 : vector<16x128xf32>
    %cst = arith.constant 0.000000e+00 : f32
    %15 = vector.broadcast %cst : f32 to vector<16x128xf32>
    %16 = arith.select %9, %14, %15 : vector<16x128xi1>, vector<16x128xf32>
    %17 = arith.subf %10, %12 : vector<16x128xf32>
    %18 = math.absf %17 : vector<16x128xf32>
    %cst_7 = arith.constant 0.000000e+00 : f32
    %19 = vector.broadcast %cst_7 : f32 to vector<16x128xf32>
    %20 = arith.select %9, %18, %19 : vector<16x128xi1>, vector<16x128xf32>
    %21 = arith.subf %11, %12 : vector<16x128xf32>
    %22 = math.absf %21 : vector<16x128xf32>
    %cst_8 = arith.constant 0.000000e+00 : f32
    %23 = vector.broadcast %cst_8 : f32 to vector<16x128xf32>
    %24 = arith.select %9, %22, %23 : vector<16x128xi1>, vector<16x128xf32>
    %c0_9 = arith.constant 0 : index
    %c0_10 = arith.constant 0 : index
    %c0_11 = arith.constant 0 : index
    %25 = vector.load %arg5[%c0_9, %c0_10, %c0_11] : memref<1x8x128xf32, #tpu.memory_space<vmem>>, vector<1x8x128xf32>
    %26 = vector.shape_cast %25 : vector<1x8x128xf32> to vector<8x128xf32>
    %27 = vector.shape_cast %16 : vector<16x128xf32> to vector<2x8x128xf32>
    %cst_12 = arith.constant dense<0.000000e+00> : vector<8x128xf32>
    %28 = vector.multi_reduction <add>, %27, %cst_12 [0] : vector<2x8x128xf32> to vector<8x128xf32>
    %29 = arith.addf %26, %28 : vector<8x128xf32>
    %c0_13 = arith.constant 0 : index
    %c0_14 = arith.constant 0 : index
    %c0_15 = arith.constant 0 : index
    %30 = vector.load %arg5[%c0_13, %c0_14, %c0_15] : memref<1x8x128xf32, #tpu.memory_space<vmem>>, vector<1x8x128xf32>
    %31 = vector.shape_cast %30 : vector<1x8x128xf32> to vector<8x128xf32>
    %32 = vector.shape_cast %29 : vector<8x128xf32> to vector<1x8x128xf32>
    tpu.vector_store %arg5[%c0_13, %c0_14, %c0_15], %32 {strides = array<i32>} : memref<1x8x128xf32, #tpu.memory_space<vmem>>, vector<1x8x128xf32>,
    %c0_16 = arith.constant 0 : index
    %c0_17 = arith.constant 0 : index
    %c0_18 = arith.constant 0 : index
    %33 = vector.load %arg6[%c0_16, %c0_17, %c0_18] : memref<1x8x128xf32, #tpu.memory_space<vmem>>, vector<1x8x128xf32>
    %34 = vector.shape_cast %33 : vector<1x8x128xf32> to vector<8x128xf32>
    %35 = vector.shape_cast %20 : vector<16x128xf32> to vector<2x8x128xf32>
    %cst_19 = arith.constant dense<0.000000e+00> : vector<8x128xf32>
    %36 = vector.multi_reduction <add>, %35, %cst_19 [0] : vector<2x8x128xf32> to vector<8x128xf32>
    %37 = arith.addf %34, %36 : vector<8x128xf32>
    %c0_20 = arith.constant 0 : index
    %c0_21 = arith.constant 0 : index
    %c0_22 = arith.constant 0 : index
    %38 = vector.load %arg6[%c0_20, %c0_21, %c0_22] : memref<1x8x128xf32, #tpu.memory_space<vmem>>, vector<1x8x128xf32>
    %39 = vector.shape_cast %38 : vector<1x8x128xf32> to vector<8x128xf32>
    %40 = vector.shape_cast %37 : vector<8x128xf32> to vector<1x8x128xf32>
    tpu.vector_store %arg6[%c0_20, %c0_21, %c0_22], %40 {strides = array<i32>} : memref<1x8x128xf32, #tpu.memory_space<vmem>>, vector<1x8x128xf32>,
    %c0_23 = arith.constant 0 : index
    %c0_24 = arith.constant 0 : index
    %c0_25 = arith.constant 0 : index
    %41 = vector.load %arg7[%c0_23, %c0_24, %c0_25] : memref<1x8x128xf32, #tpu.memory_space<vmem>>, vector<1x8x128xf32>
    %42 = vector.shape_cast %41 : vector<1x8x128xf32> to vector<8x128xf32>
    %43 = vector.shape_cast %24 : vector<16x128xf32> to vector<2x8x128xf32>
    %cst_26 = arith.constant dense<0.000000e+00> : vector<8x128xf32>
    %44 = vector.multi_reduction <add>, %43, %cst_26 [0] : vector<2x8x128xf32> to vector<8x128xf32>
    %45 = arith.addf %42, %44 : vector<8x128xf32>
    %c0_27 = arith.constant 0 : index
    %c0_28 = arith.constant 0 : index
    %c0_29 = arith.constant 0 : index
    %46 = vector.load %arg7[%c0_27, %c0_28, %c0_29] : memref<1x8x128xf32, #tpu.memory_space<vmem>>, vector<1x8x128xf32>
    %47 = vector.shape_cast %46 : vector<1x8x128xf32> to vector<8x128xf32>
    %48 = vector.shape_cast %45 : vector<8x128xf32> to vector<1x8x128xf32>
    tpu.vector_store %arg7[%c0_27, %c0_28, %c0_29], %48 {strides = array<i32>} : memref<1x8x128xf32, #tpu.memory_space<vmem>>, vector<1x8x128xf32>,
    return
  }
  func.func @transform_0(%arg0: i32, %arg1: i32) -> (i32, i32) {
    %c1_i32 = arith.constant 1 : i32
    %0 = arith.muli %arg0, %c1_i32 : i32
    %1 = arith.addi %0, %arg1 : i32
    %c0_i32 = arith.constant 0 : i32
    %2 = arith.minsi %1, %c0_i32 : i32
    %c0_i32_0 = arith.constant 0 : i32
    %c0_i32_1 = arith.constant 0 : i32
    return %2, %c0_i32_0 : i32, i32
  }
  func.func @transform_1(%arg0: i32, %arg1: i32) -> (i32, i32) {
    %c1_i32 = arith.constant 1 : i32
    %0 = arith.muli %arg0, %c1_i32 : i32
    %1 = arith.addi %0, %arg1 : i32
    %c0_i32 = arith.constant 0 : i32
    %2 = arith.minsi %1, %c0_i32 : i32
    %c0_i32_0 = arith.constant 0 : i32
    %c0_i32_1 = arith.constant 0 : i32
    return %2, %c0_i32_0 : i32, i32
  }
  func.func @transform_2(%arg0: i32, %arg1: i32) -> (i32, i32) {
    %c1_i32 = arith.constant 1 : i32
    %0 = arith.muli %arg0, %c1_i32 : i32
    %1 = arith.addi %0, %arg1 : i32
    %c0_i32 = arith.constant 0 : i32
    %2 = arith.minsi %1, %c0_i32 : i32
    %c0_i32_0 = arith.constant 0 : i32
    %c0_i32_1 = arith.constant 0 : i32
    return %2, %c0_i32_0 : i32, i32
  }
  func.func @transform_3(%arg0: i32, %arg1: i32) -> (i32, i32, i32) {
    %c0_i32 = arith.constant 0 : i32
    %c0_i32_0 = arith.constant 0 : i32
    %c0_i32_1 = arith.constant 0 : i32
    return %arg0, %c0_i32, %c0_i32_0 : i32, i32, i32
  }
  func.func @transform_4(%arg0: i32, %arg1: i32) -> (i32, i32, i32) {
    %c0_i32 = arith.constant 0 : i32
    %c0_i32_0 = arith.constant 0 : i32
    %c0_i32_1 = arith.constant 0 : i32
    return %arg0, %c0_i32, %c0_i32_0 : i32, i32, i32
  }
  func.func @transform_5(%arg0: i32, %arg1: i32) -> (i32, i32, i32) {
    %c0_i32 = arith.constant 0 : i32
    %c0_i32_0 = arith.constant 0 : i32
    %c0_i32_1 = arith.constant 0 : i32
    return %arg0, %c0_i32, %c0_i32_0 : i32, i32, i32
  }
}

</mosaic_0001>

<bundles_post_ra>
// kernel: tpu_custom_call.1
= control target key start
LH: loop header
LB: loop body
LE: loop exit
PB: predicated region body
PF: predicated region fallthrough
CT: control target
= control target key end

     0   :  { %s1453_s0 = inlined_call_operand.hbm [shape: f32[16,128], index: 0, kind: input, shape index: {}]   ;;  %s1454_s1 = inlined_call_operand.hbm [shape: f32[16,128], index: 1, kind: input, shape index: {}]   ;;  %s1455_s2 = inlined_call_operand.hbm [shape: f32[16,128], index: 2, kind: input, shape index: {}]   ;;  %s1456_s3 = inlined_call_operand.hbm [shape: f32[2,8,128], index: 3, kind: output, shape index: {0}]   ;;  %s1457_s4 = inlined_call_operand.hbm [shape: f32[2,8,128], index: 4, kind: output, shape index: {1}]   ;;  %s1458_s5 = inlined_call_operand.hbm [shape: f32[2,8,128], index: 5, kind: output, shape index: {2}]  }
   0x1   :  { %1469 = sst [smem:[#allocation21_spill]] %s1454_s1 }
   0x2   :  { %11 = vsyncpa [#allocation3], 0 }
   0x3   :  { %13 = vsyncpa [#allocation3 + $0x1], 0 }
   0x4   :  { %14 = vsyncpa [#allocation6], 0 }
   0x5   :  { %16 = vsyncpa [#allocation6 + $0x1], 0 }
   0x6   :  { %17 = vsyncpa [#allocation4], 0 }
   0x7   :  { %19 = vsyncpa [#allocation4 + $0x1], 0 }
   0x8   :  { %20 = vsyncpa [#allocation10], 0 }
   0x9   :  { %22 = vsyncpa [#allocation10 + $0x1], 0  ;;  %s1111_s18 = smov 0   ;;  %s1113_s19 = smov 0  }
   0xa   :  { %s1115_s20 = smov 0   ;;  %s1117_s21 = smov 0  }
   0xb   :  { %s1119_s22 = smov 0   ;;  %s1121_s23 = smov 0  }
   0xc   :  { %s1123_s24 = smov 0   ;;  %s1125_s25 = smov 0  }
   0xd LB: > { %1470 = sst [smem:[#allocation16_spill]] %s1051_s20  ;;  %s1150_s26 = sadd.s32 4294967295, %s1071_s25   ;;  %s1071_s25 = sphi %s1125_s25, %s28_s25   ;;  %s1067_s24 = sphi %s1123_s24, %s1500_s24   ;;  %s1063_s23 = sphi %s1121_s23, %s1499_s23   ;;  %s1059_s22 = sphi %s1119_s22, %s1443_s22   ;;  %s1055_s21 = sphi %s1117_s21, %s1503_s21   ;;  %s1051_s20 = sphi %s1115_s20, %s1498_s20   ;;  %s1047_s19 = sphi %s1113_s19, %s1502_s19   ;;  %s1043_s18 = sphi %s1111_s18, %s1501_s18  }
   0xe   : > { %1471 = sst [smem:[#allocation17_spill]] %s1067_s24  ;;  %s1461_s27 = sadd.s32 4294967294, %s1071_s25  }
   0xf   : > { %1472 = sst [smem:[#allocation18_spill]] %s1071_s25  ;;  %s40_s28 = sadd.s32 1, %s1067_s24 }
  0x10   : > { %p42_p0 = scmp.ge.s32.totalorder %s40_s28, 2  ;;  %p1040_p1 = scmp.ne.s32.totalorder %s1059_s22, 0 }
  0x11   : > { %p61_p2 = scmp.eq.s32.totalorder %s1071_s25, 0  ;;  %p66_p3 = scmp.ne.s32.totalorder %s1059_s22, %s1055_s21 }
  0x12   : > { %s1505_s28 = smov (%p42_p0, %s40_s28), 0  ;;  %p67_p5 = scmp.eq.s32.totalorder %s1150_s26, 0 }
  0x13   : > { %1473 = sst [smem:[#allocation19_spill]] %s1505_s28  ;;  %p1159_p4 = por %p1040_p1, %p61_p2 }
  0x14   : > { %p1164_p6 = por %p67_p5, %p66_p3  ;;  %s140_s6 = ssub.s32 %s1067_s24, %s1505_s28 }
  0x15   : > { %p141_p7 = scmp.eq.s32.totalorder %s140_s6, 0  ;;  %s143_s7 = sadd.s32 1, %s1051_s20 }
  0x16   : > { %s1475_s30 = scalar_select %p1164_p6, 1, 0 }
  0x17   : > { %s1172_s8 = scalar_select %p141_p7, %s1051_s20, %s143_s7  }
  0x18   : > { %p153_p8 = scmp.ne.s32.totalorder %s1051_s20, %s1047_s19  ;;  %p154_p9 = scmp.eq.s32.totalorder %s1150_s26, 1 }
  0x19   : > { %1476 = sst [smem:[#allocation20_spill]] %s1172_s8  ;;  %p159_p10 = scmp.ne.s32.totalorder %s1047_s19, %s1043_s18 }
  0x1a   : > { %p160_p11 = scmp.eq.s32.totalorder %s1461_s27, 1  ;;  %p1181_p12 = por %p154_p9, %p153_p8 }
  0x1b   : > { %p737_p1 = scmp.lt.s32.totalorder %s1071_s25, 2  ;;  %s256_s12 = sand.u32 1, %s1071_s25  }
  0x1c   : > { %s1477_s9 = scalar_select %p1181_p12, 1, 0 }
  0x1d   : > { %p1186_p0 = por %p160_p11, %p159_p10  ;;  %p1193_p2 = pnand %p737_p1, %p1159_p4 }
  0x1e   : > { %s1073_s13 = smov [#allocation5]   ;;  %s1201_s15 = scalar_lea.sflag [#allocation6], %s256_s12 }
  0x1f   : > { %s1478_s10 = scalar_select %p1186_p0, 1, 0 }
  0x20   : > { %s1479_s11 = scalar_select %p1193_p2, 1, 0 }
  0x21   : > { %s270_s14 = sshll.u32 %s1073_s13, 4  ;;  %s1480_s1 = sld [smem:[#allocation21_spill]]  ;;  %s1198_s14 = int_to_ptr.vmem [resolvable:$true] %s270_s14 }
  0x22   : > { %p1211_p5 = pneg %p1193_p2 }
  0x27   : > { %s814_s21 = scalar_lea.hbm %s1480_s1, 256 }
  0x28   : > { %p815_p4 = scmp.ne.s32.totalorder %s1480_s1, %s814_s21  ;;  %p821_p9 = scmp.lt.u32.totalorder %s814_s21, %s814_s21 }
  0x29   : > { %p823_p10 = scmp.lt.u32.totalorder %s814_s21, %s1480_s1 }
  0x2a   : > { %p817_p7 = pnand %p1211_p5, %p815_p4 }
  0x2b   : > { %p824_p11 = por %p823_p10, %p821_p9 }
  0x2c   : > { %p818_p8 = pneg %p817_p7 }
  0x2e   : > { %p825_p1 = pnand %p824_p11, %p818_p8 }
  0x30   : > { %828 = shalt.err (!%p825_p1)
}
  0x31   : > { %s829_s16 = scalar_lea.vmem %s1198_s14, 256  ;;  %s836_s17 = scalar_lea.vmem %s1198_s14, 512 }
  0x32   : > { %p830_p13 = scmp.ne.s32.totalorder %s1198_s14, %s829_s16  ;;  %p837_p4 = scmp.lt.s32.totalorder %s1198_s14, %s1198_s14 }
  0x33   : > { %p838_p7 = scmp.lt.s32.totalorder %s836_s17, %s829_s16 }
  0x34   : > { %p832_p3 = pnand %p830_p13, %p1211_p5 }
  0x35   : > { %p839_p12 = por %p838_p7, %p837_p4 }
  0x36   : > { %p833_p0 = pneg %p832_p3 }
  0x38   : > { %p840_p6 = pnand %p839_p12, %p833_p0 }
  0x3a   : > { %843 = shalt.err (!%p840_p6)
}
  0x3b   : > { %s1074_s21 = smov 128   ;;  %s1075_s6 = smov 8  }
  0x3c   : > { %723 = dma.hbm_to_vmem [thread:$0]  (!%p1193_p2), %s1480_s1, 256, %s1198_s14, %s1201_s15, %s1074_s21, %s1074_s21, %s1075_s6  }
  0x3d   : > { %p302_p13 = scmp.lt.s32.totalorder %s1071_s25, 3  ;;  %p1482_p3 = scmp.ge.s32.totalorder %s1071_s25, 1 }
  0x3e   : > { %s1076_s16 = smov [#allocation2]   ;;  %s844_s24 = scalar_lea.hbm %s1453_s0, 256 }
  0x3f   : > { %p1240_p12 = pnand %p1482_p3, %p302_p13  ;;  %s246_s17 = sshll.u32 %s1076_s16, 4  ;;  %s247_s17 = int_to_ptr.vmem [resolvable:$true] %s246_s17 }
  0x40   : > { %p845_p6 = scmp.ne.s32.totalorder %s1453_s0, %s844_s24  ;;  %p851_p9 = scmp.lt.u32.totalorder %s844_s24, %s844_s24 }
  0x41   : > { %s1483_s13 = scalar_select %p1240_p12, 1, 0 }
  0x42   : > { %p847_p0 = pnand %p845_p6, %p1211_p5  ;;  %p853_p10 = scmp.lt.u32.totalorder %s844_s24, %s1453_s0 }
  0x44   : > { %p848_p8 = pneg %p847_p0  ;;  %p854_p11 = por %p853_p10, %p851_p9 }
  0x46   : > { %p855_p1 = pnand %p854_p11, %p848_p8 }
  0x48   : > { %858 = shalt.err (!%p855_p1)
}
  0x49   : > { %s859_s12 = scalar_lea.vmem %s247_s17, 256  ;;  %s866_s27 = scalar_lea.vmem %s247_s17, 512 }
  0x4a   : > { %p860_p4 = scmp.ne.s32.totalorder %s247_s17, %s859_s12  ;;  %p867_p3 = scmp.lt.s32.totalorder %s247_s17, %s247_s17 }
  0x4b   : > { %p868_p12 = scmp.lt.s32.totalorder %s866_s27, %s859_s12 }
  0x4c   : > { %p862_p7 = pnand %p860_p4, %p1211_p5 }
  0x4d   : > { %p869_p2 = por %p868_p12, %p867_p3 }
  0x4e   : > { %p863_p13 = pneg %p862_p7 }
  0x50   : > { %p870_p6 = pnand %p869_p2, %p863_p13 }
  0x52   : > { %873 = shalt.err (!%p870_p6)
}
  0x53   : > { %p1484_p0 = scmp.ne.s32.totalorder %s1479_s11, 0  ;;  %s1077_s28 = smov [#allocation7]  }
  0x54   : > { %s294_s8 = sshll.u32 %s1077_s28, 4  ;;  %s874_s7 = scalar_lea.hbm %s1455_s2, 256  ;;  %s295_s8 = int_to_ptr.vmem [resolvable:$true] %s294_s8 }
  0x55   : > { %720 = dma.hbm_to_vmem [thread:$0]  (!%p1484_p0), %s1453_s0, 256, %s247_s17, [#allocation3], %s1074_s21, %s1074_s21, %s1075_s6  }
  0x56   : > { %p875_p2 = scmp.ne.s32.totalorder %s1455_s2, %s874_s7  ;;  %p881_p9 = scmp.lt.u32.totalorder %s874_s7, %s874_s7 }
  0x57   : > { %p883_p10 = scmp.lt.u32.totalorder %s874_s7, %s1455_s2 }
  0x58   : > { %p877_p12 = pnand %p875_p2, %p1211_p5 }
  0x59   : > { %p884_p11 = por %p883_p10, %p881_p9 }
  0x5a   : > { %p878_p8 = pneg %p877_p12 }
  0x5c   : > { %p885_p1 = pnand %p884_p11, %p878_p8 }
  0x5e   : > { %888 = shalt.err (!%p885_p1)
}
  0x5f   : > { %s889_s17 = scalar_lea.vmem %s295_s8, 256  ;;  %s896_s20 = scalar_lea.vmem %s295_s8, 512 }
  0x60   : > { %p890_p4 = scmp.ne.s32.totalorder %s295_s8, %s889_s17  ;;  %p897_p3 = scmp.lt.s32.totalorder %s295_s8, %s295_s8 }
  0x61   : > { %p898_p6 = scmp.lt.s32.totalorder %s896_s20, %s889_s17 }
  0x62   : > { %p892_p7 = pnand %p890_p4, %p1211_p5 }
  0x63   : > { %p899_p0 = por %p898_p6, %p897_p3 }
  0x64   : > { %p893_p13 = pneg %p892_p7 }
  0x66   : > { %p900_p2 = pnand %p899_p0, %p893_p13 }
  0x68   : > { %903 = shalt.err (!%p900_p2)
}
  0x69   : > { %p1485_p12 = scmp.ne.s32.totalorder %s1479_s11, 0  ;;  %p1486_p8 = scmp.ne.s32.totalorder %s1483_s13, 0 }
  0x6a   : > { %s308_s29 = sand.u32 (!%p1486_p8), 1, %s1059_s22   ;;  %p1487_p5 = scmp.ne.s32.totalorder (!%p1486_p8), %s1475_s30, 0 }
  0x6b   : > { %726 = dma.hbm_to_vmem [thread:$0]  (!%p1485_p12), %s1455_s2, 256, %s295_s8, %s1201_s15, %s1074_s21, %s1074_s21, %s1075_s6  }
  0x6c   : > { %306 = sbr.rel (%p1486_p8) target bundleno = 196 (0xc4), region = 32  ;;  %s687_s24 = sshll.u32 (!%p1486_p8), %s308_s29, 4 }
  0x6d   : > { %s309_s28 = scalar_lea.sflag (!%p1486_p8), [#allocation3], %s308_s29  ;;  %s312_s16 = scalar_lea.vmem (!%p1486_p8), [#allocation2], %s687_s24 }
  0x73   : > { %1025 = dma.done.wait (%p1487_p5), %s309_s28, 256  }
  0x74   : > { %1027 = vsyncadd (%p1487_p5), %s309_s28, 4294967040  ;;  %s317_s11 = sand.u32 1, %s1150_s26   ;;  %s321_s21 = scalar_lea.vmem [#allocation5], %s687_s24 }
  0x75   : > { %s318_s15 = scalar_lea.sflag [#allocation6], %s317_s11 }
  0x76   : > { %1029 = dma.done.wait (%p1487_p5), %s318_s15, 512  }
  0x77   : > { %1031 = vsyncadd (%p1487_p5), %s318_s15, 4294966784  ;;  %v399_v0 = vlaneseq  ;;  %s693_s6 = sshll.u32 %s1063_s23, 4  ;;  %s360_s13 = sand.u32 1, %s1047_s19   ;;  %v405_v4 = vld [vmem:[%s312_s16] sm:$0xff]  ;;  %v406_v5 = vld [vmem:[%s312_s16 + $0x8] sm:$0xff] }
  0x78   : > { %s398_s8 = ssub.s32 16, %s693_s6  ;;  %s1305_s14 = sshll.u32 %s360_s13, 3  ;;  %v407_v10 = vld [vmem:[%s321_s21] sm:$0xff]  ;;  %v408_v11 = vld [vmem:[%s321_s21 + $0x8] sm:$0xff] }
  0x79   : > { %v400_v1 = vshrl.u32 %v399_v0, 7  ;;  %v402_v2 = vstv %s398_s8  ;;  %s330_s7 = scalar_lea.vmem [#allocation7], %s687_s24  ;;  %v411_v13 = vsub.f32 %v405_v4, %v407_v10  ;;  %v412_v14 = vsub.f32 %v406_v5, %v408_v11  ;;  %s697_s30 = sshll.u32 %s1063_s23, 7 }
  0x7a   : > { %v409_v6 = vld [vmem:[%s330_s7] sm:$0xff]  ;;  %v410_v8 = vld [vmem:[%s330_s7 + $0x8] sm:$0xff]  ;;  %s369_s12 = scalar_lea.vmem [#allocation9], %s1305_s14  ;;  %s376_s17 = scalar_lea.vmem [#allocation11], %s1305_s14 }
  0x7b   : > { %v401_v3 = vadd.s32 8, %v400_v1  ;;  %vm1307_vm0 = vcmp.lt.s32.totalorder %v400_v1, %v402_v2  ;;  %v417_v9 = vsub.f32 %v405_v4, %v409_v6  ;;  %v418_v12 = vsub.f32 %v406_v5, %v410_v8  ;;  %s478_s27 = sshll.u32 %s369_s12, 4  ;;  %s491_s20 = sshll.u32 %s376_s17, 4  ;;  %s1336_s27 = int_to_ptr.vmem [resolvable:$true] %s478_s27  ;;  %s1345_s20 = int_to_ptr.vmem [resolvable:$true] %s491_s20 }
  0x7c   : > { %v423_v15 = vsub.f32 %v407_v10, %v409_v6  ;;  %v424_v18 = vsub.f32 %v408_v11, %v410_v8  ;;  %v413_v20 = vand.u32 2147483647, %v411_v13  ;;  %v414_v21 = vand.u32 2147483647, %v412_v14  ;;  %s362_s23 = scalar_lea.vmem [#allocation8], %s1305_s14  ;;  %s1334_s24 = scalar_lea.hbm %s1457_s4, %s697_s30 }
  0x7d   : > { %vm1311_vm1 = vcmp.lt.s32.totalorder %v401_v3, %v402_v2  ;;  %v419_v17 = vand.u32 2147483647, %v417_v9  ;;  %v420_v19 = vand.u32 2147483647, %v418_v12  ;;  %s465_s1 = sshll.u32 %s362_s23, 4  ;;  %s1341_s15 = scalar_lea.hbm %s1456_s3, %s697_s30  ;;  %s1343_s1 = int_to_ptr.vmem [resolvable:$true] %s465_s1 }
  0x7e   : > { %v425_v23 = vand.u32 2147483647, %v423_v15  ;;  %v426_v24 = vand.u32 2147483647, %v424_v18  ;;  %v415_v26 = vsel %vm1307_vm0, %v413_v20, 0.0  ;;  %v416_v27 = vsel %vm1311_vm1, %v414_v21, 0.0  ;;  %s1350_s8 = scalar_lea.hbm %s1458_s5, %s697_s30 }
  0x7f   : > { %v421_v22 = vsel %vm1307_vm0, %v419_v17, 0.0  ;;  %v422_v25 = vsel %vm1311_vm1, %v420_v19, 0.0  ;;  %v430_v29 = vadd.f32 %v416_v27, %v415_v26  ;;  %s1354_s14 = scalar_lea.sflag [#allocation10], %s317_s11  ;;  %s904_s7 = scalar_lea.vmem %s1336_s27, 128 }
  0x80   : > { %v434_v28 = vadd.f32 %v422_v25, %v421_v22  ;;  %v427_v30 = vsel %vm1307_vm0, %v425_v23, 0.0  ;;  %v428_v31 = vsel %vm1311_vm1, %v426_v24, 0.0  ;;  %p905_p0 = scmp.ne.s32.totalorder %s1336_s27, %s904_s7  ;;  %p1492_p9 = scmp.ne.s32.totalorder %s1477_s9, 0 }
  0x81   : > { %v438_v32 = vadd.f32 %v428_v31, %v427_v30  ;;  %432 = vst [vmem:[%s362_s23] sm:$0xff] %v430_v29  ;;  %s1078_s25 = smov [#allocation9]  }
  0x82   : > { %436 = vst [vmem:[%s369_s12] sm:$0xff] %v434_v28  ;;  %p906_p10 = pnand %p905_p0, %p1492_p9  ;;  %s908_s29 = sshll.u32 %s1078_s25, 4  ;;  %s909_s29 = int_to_ptr.vmem [resolvable:$false] %s908_s29 }
  0x83   : > { %440 = vst [vmem:[%s376_s17] sm:$0xff] %v438_v32  ;;  %s910_s28 = scalar_lea.vmem %s909_s29, 256  ;;  %p911_p1 = scmp.lt.s32.totalorder %s1336_s27, %s909_s29 }
  0x84   : > { %p907_p11 = pneg %p906_p10  ;;  %p912_p4 = scmp.lt.s32.totalorder %s910_s28, %s904_s7 }
  0x86   : > { %p913_p7 = por %p912_p4, %p911_p1 }
  0x88   : > { %p914_p13 = pnand %p913_p7, %p907_p11 }
  0x8a   : > { %917 = shalt.err (!%p914_p13)
}
  0x8b   : > { %s918_s26 = scalar_lea.hbm %s1334_s24, 128  ;;  %s922_s12 = scalar_lea.hbm %s1457_s4, 256 }
  0x8c   : > { %p919_p3 = scmp.ne.s32.totalorder %s1334_s24, %s918_s26  ;;  %p923_p12 = scmp.lt.u32.totalorder %s1334_s24, %s1457_s4 }
  0x8d   : > { %p924_p8 = scmp.lt.u32.totalorder %s922_s12, %s918_s26  ;;  %p926_p0 = scmp.lt.u32.totalorder %s918_s26, %s1334_s24 }
  0x8e   : > { %p920_p6 = pnand %p919_p3, %p1492_p9 }
  0x8f   : > { %p925_p5 = por %p924_p8, %p923_p12 }
  0x90   : > { %p921_p2 = pneg %p920_p6 }
  0x91   : > { %p927_p10 = por %p926_p0, %p925_p5 }
  0x93   : > { %p928_p11 = pnand %p927_p10, %p921_p2 }
  0x95   : > { %931 = shalt.err (!%p928_p11)
}
  0x96   : > { %712 = dma.vmem_to_hbm [thread:$0]  (%p1492_p9), %s1336_s27, 128, %s1334_s24, %s1354_s14  }
  0x97   : > { %s442_s16 = scalar_lea.sflag [#allocation4], %s360_s13  ;;  %s932_s21 = scalar_lea.vmem %s1343_s1, 128 }
  0x98   : > { %p933_p1 = scmp.ne.s32.totalorder %s1343_s1, %s932_s21  ;;  %s1079_s6 = smov [#allocation8]  }
  0x99   : > { %s936_s7 = sshll.u32 %s1079_s6, 4  ;;  %s937_s7 = int_to_ptr.vmem [resolvable:$false] %s936_s7 }
  0x9a   : > { %p934_p4 = pnand %p933_p1, %p1492_p9  ;;  %s938_s25 = scalar_lea.vmem %s937_s7, 256 }
  0x9b   : > { %p939_p13 = scmp.lt.s32.totalorder %s1343_s1, %s937_s7  ;;  %p940_p3 = scmp.lt.s32.totalorder %s938_s25, %s932_s21 }
  0x9c   : > { %p935_p7 = pneg %p934_p4 }
  0x9d   : > { %p941_p6 = por %p940_p3, %p939_p13 }
  0x9f   : > { %p942_p2 = pnand %p941_p6, %p935_p7 }
  0xa1   : > { %945 = shalt.err (!%p942_p2)
}
  0xa2   : > { %s946_s13 = scalar_lea.hbm %s1341_s15, 128  ;;  %s950_s29 = scalar_lea.hbm %s1456_s3, 256 }
  0xa3   : > { %p947_p12 = scmp.ne.s32.totalorder %s1341_s15, %s946_s13  ;;  %p951_p0 = scmp.lt.u32.totalorder %s1341_s15, %s1456_s3 }
  0xa4   : > { %p952_p10 = scmp.lt.u32.totalorder %s950_s29, %s946_s13  ;;  %p954_p1 = scmp.lt.u32.totalorder %s946_s13, %s1341_s15 }
  0xa5   : > { %p948_p8 = pnand %p947_p12, %p1492_p9 }
  0xa6   : > { %p953_p11 = por %p952_p10, %p951_p0 }
  0xa7   : > { %p949_p5 = pneg %p948_p8 }
  0xa8   : > { %p955_p4 = por %p954_p1, %p953_p11 }
  0xaa   : > { %p956_p7 = pnand %p955_p4, %p949_p5 }
  0xac   : > { %959 = shalt.err (!%p956_p7)
}
  0xad   : > { %711 = dma.vmem_to_hbm [thread:$0]  (%p1492_p9), %s1343_s1, 128, %s1341_s15, %s442_s16  }
  0xae   : > { %s960_s11 = scalar_lea.vmem %s1345_s20, 128  ;;  %s1080_s30 = smov [#allocation11]  }
  0xaf   : > { %p961_p13 = scmp.ne.s32.totalorder %s1345_s20, %s960_s11  ;;  %s964_s12 = sshll.u32 %s1080_s30, 4  ;;  %s965_s12 = int_to_ptr.vmem [resolvable:$false] %s964_s12 }
  0xb0   : > { %s966_s17 = scalar_lea.vmem %s965_s12, 256  ;;  %p967_p2 = scmp.lt.s32.totalorder %s1345_s20, %s965_s12 }
  0xb1   : > { %p962_p3 = pnand %p961_p13, %p1492_p9  ;;  %p968_p12 = scmp.lt.s32.totalorder %s966_s17, %s960_s11 }
  0xb3   : > { %p963_p6 = pneg %p962_p3  ;;  %p969_p8 = por %p968_p12, %p967_p2 }
  0xb5   : > { %p970_p5 = pnand %p969_p8, %p963_p6 }
  0xb7   : > { %973 = shalt.err (!%p970_p5)
}
  0xb8   : > { %s974_s1 = scalar_lea.hbm %s1350_s8, 128  ;;  %s978_s16 = scalar_lea.hbm %s1458_s5, 256 }
  0xb9   : > { %p975_p0 = scmp.ne.s32.totalorder %s1350_s8, %s974_s1  ;;  %p979_p1 = scmp.lt.u32.totalorder %s1350_s8, %s1458_s5 }
  0xba   : > { %p980_p4 = scmp.lt.u32.totalorder %s978_s16, %s974_s1  ;;  %p982_p13 = scmp.lt.u32.totalorder %s974_s1, %s1350_s8 }
  0xbb   : > { %p976_p10 = pnand %p975_p0, %p1492_p9 }
  0xbc   : > { %p981_p7 = por %p980_p4, %p979_p1 }
  0xbd   : > { %p977_p11 = pneg %p976_p10 }
  0xbe   : > { %p983_p3 = por %p982_p13, %p981_p7 }
  0xc0   : > { %p984_p6 = pnand %p983_p3, %p977_p11 }
  0xc2   : > { %987 = shalt.err (!%p984_p6)
}
  0xc3   : > { %713 = dma.vmem_to_hbm [thread:$0]  (%p1492_p9), %s1345_s20, 128, %s1350_s8, %s1354_s14  }
  0xc4 PF: > { %s1493_s7 = sld [smem:[#allocation18_spill]]  ;;  %s503_s25 = sand.u32 1, %s1043_s18  }
  0xc5   : > { %p1494_p2 = scmp.ne.s32.totalorder %s1478_s10, 0  ;;  %s504_s13 = scalar_lea.sflag [#allocation4], %s503_s25 }
  0xca   : > { %p1495_p12 = scmp.ge.s32.totalorder %s1493_s7, 2 }
  0xcc   : > { %p728_p8 = pnand %p1495_p12, %p1494_p2 }
  0xce   : > { %1033 = dma.done.wait (!%p728_p8), %s504_s13, 128  }
  0xcf   : > { %1035 = vsyncadd (!%p728_p8), %s504_s13, 4294967168  ;;  %s1496_s27 = sadd.s32 4294967294, %s1493_s7  }
  0xd0   : > { %s512_s24 = sand.u32 1, %s1496_s27  }
  0xd1   : > { %s513_s29 = scalar_lea.sflag [#allocation10], %s512_s24 }
  0xd2   : > { %1037 = dma.done.wait (!%p728_p8), %s513_s29, 256  }
  0xd3   : > { %1039 = vsyncadd (!%p728_p8), %s513_s29, 4294967040  ;;  %s28_s25 = sadd.s32 1, %s1493_s7   ;;  %s1497_s9 = sld [smem:[#allocation16_spill]] }
  0xd4   : > { %p25_p9 = scmp.ge.s32.totalorder %s28_s25, 4   ;;  %s1498_s20 = sld [smem:[#allocation20_spill]] }
  0xd5   : > { %s1499_s23 = sld [smem:[#allocation17_spill]]  ;;  %s1500_s24 = sld [smem:[#allocation19_spill]] }
  0xd6   : > { %s1501_s18 = smov %s1047_s19  ;;  %s1503_s21 = smov %s1059_s22 }
  0xd7   : > { %s1443_s22 = smov 0   ;;  %27 = sbr.rel (!%p25_p9) target bundleno = 13 (0xd), region = 137 }
  0xd9   : > { %s1502_s19 = smov %s1497_s9 }
  0xde   :  { %527 = vsyncpa [#allocation3], 1 }
  0xdf   :  { %529 = vsyncpa [#allocation3 + $0x1], 1 }
  0xe0   :  { %530 = vsyncpa [#allocation6], 1 }
  0xe1   :  { %532 = vsyncpa [#allocation6 + $0x1], 1 }
  0xe2   :  { %533 = vsyncpa [#allocation4], 1 }
  0xe3   :  { %535 = vsyncpa [#allocation4 + $0x1], 1 }
  0xe4   :  { %536 = vsyncpa [#allocation10], 1 }
  0xe5   :  { %538 = vsyncpa [#allocation10 + $0x1], 1 }

</bundles_post_ra>
